<compile_context>
chip_gen: v7x
topology: tpu7x:2x2x1
jax: 0.10.0
libtpu: 0.0.40
codegen_flags: <defaults>
</compile_context>

<pallas_src>
import jax
import jax.numpy as jnp
from jax import lax
from jax.experimental import pallas as pl
from jax.experimental.pallas import tpu as pltpu

# ----------------------------- model dims (small) ----------------------------
B = 2            # batch
C_IN = 3         # image channels
H = W = 16       # spatial
PATCH = 4        # patch size -> P = (H//PATCH)*(W//PATCH) patches
P = (H // PATCH) * (W // PATCH)          # 16
PATCH_DIM = C_IN * PATCH * PATCH         # 48
FEAT = 64        # "resnet50 in_features" stand-in
EMB = 32         # embedding_dim
SEQ = 8          # text sequence length
VOCAB = 50       # token vocabulary
D_TOK = 32       # token embedding dim
TEMPERATURE = 0.07

# ------------------------- packed parameter slab layout ----------------------
SLAB_W = 128                      # lane-dense slab width
WP_R0 = 0                         # w_patch      rows [0,48),    cols [0,FEAT)
BP_R0 = 48                        # b_patch      row  48,        cols [0,FEAT)
PIMG_R0 = 56                      # pool_img     rows [56,58),   cols [0,B*P)
TOK_R0 = 64                       # tok_table    rows [64,114),  cols [0,D_TOK)
W1_R0 = 120                       # fused fc|txt rows [120,248), cols [0,2*EMB)
W2_R0 = 248                       # fused projs  rows [248,320), cols [0,2*EMB)
W1_ROWS_PAD = 128                 # (FEAT + D_TOK + 1) zero-padded to 128 (aligned K)
W2_ROWS_PAD = 72                  # (2*EMB + 1)        zero-padded to 72  (aligned K)
SLAB_ROWS = 320

# ------------------------------- output slab ---------------------------------
OUT_W = 128                       # lane-dense output slab width
SIM_OFF = 2 * EMB                 # column offset of the similarity block
PAD_W = OUT_W - (SIM_OFF + B)     # zero padding columns

_VMEM = pl.BlockSpec(memory_space=pltpu.MemorySpace.VMEM)
_SMEM = pl.BlockSpec(memory_space=pltpu.MemorySpace.SMEM)


# ------------------------------- fused kernel --------------------------------
def _clip_fused_kernel(patches_ref, ids_ref, slab_ref, temp_ref, out_ref):
    """image backbone + text encoder + projections + normalize + similarity."""
    f32 = jnp.float32

    # ---- static views into the packed parameter slab (zero-cost slices) -----
    w_patch = slab_ref[WP_R0:WP_R0 + PATCH_DIM, 0:FEAT]          # [48, 64]
    b_patch = slab_ref[BP_R0:BP_R0 + 1, 0:FEAT]                  # [1, 64]
    pool_img = slab_ref[PIMG_R0:PIMG_R0 + B, 0:B * P]            # [B, B*P]
    w1 = slab_ref[W1_R0:W1_R0 + W1_ROWS_PAD, 0:2 * EMB]          # [128, 64]
    w2 = slab_ref[W2_R0:W2_R0 + W2_ROWS_PAD, 0:2 * EMB]          # [72, 64]

    # ---- image encoder stand-in: patch-embed + ReLU + avg-pool (MXU) --------
    h = jnp.dot(patches_ref[...], w_patch, preferred_element_type=f32)   # [B*P, FEAT]
    h = jnp.maximum(h + b_patch, 0.0)
    pooled = jnp.dot(pool_img, h, preferred_element_type=f32)            # [B, FEAT]

    # ---- text encoder stand-in: in-kernel token gather + mean pool ----------
    # token ids come from SMEM; tok_table rows are read with dynamic sublane
    # loads from the slab (cols D_TOK..128 of that region are zero).
    rows = []
    for b in range(B):
        acc = jnp.zeros((1, SLAB_W), f32)
        for s in range(SEQ):
            r = TOK_R0 + ids_ref[b, s]
            acc = acc + slab_ref[pl.ds(r, 1), :]                          # [1, 128]
        rows.append(acc)
    tpool = jnp.concatenate(rows, axis=0)[:, 0:D_TOK] * (1.0 / SEQ)       # [B, D_TOK]

    # ---- fused block-diagonal matmuls (biases folded via constant-1 column) --
    ones = jnp.ones((B, 1), f32)
    feat_in = jnp.concatenate(
        [pooled, tpool, ones,
         jnp.zeros((B, W1_ROWS_PAD - (FEAT + D_TOK + 1)), f32)], axis=1)  # [B, 128]
    feats = jnp.dot(feat_in, w1, preferred_element_type=f32)              # [B, 64] = [img_feat|txt_feat]
    feats_aug = jnp.concatenate(
        [feats, ones, jnp.zeros((B, W2_ROWS_PAD - (2 * EMB + 1)), f32)],
        axis=1)                                                           # [B, 72]
    proj = jnp.dot(feats_aug, w2, preferred_element_type=f32)             # [B, 64] = [ip|tp]

    # ---- L2 normalize (F.normalize: x / max(|x|, eps)) via rsqrt (EUP) -------
    ip = proj[:, 0:EMB]
    tp = proj[:, EMB:2 * EMB]
    eps = 1e-12
    img_n = ip * lax.rsqrt(jnp.maximum(jnp.sum(ip * ip, axis=1, keepdims=True), eps * eps))
    txt_n = tp * lax.rsqrt(jnp.maximum(jnp.sum(tp * tp, axis=1, keepdims=True), eps * eps))

    # ---- similarity: contract axis 1 of both operands, scale by 1/T in-kernel
    # (at B=2 the implicit RHS relayout in the contraction is negligible).
    sim = lax.dot_general(img_n, txt_n, (((1,), (1,)), ((), ())),
                          preferred_element_type=f32)                     # [B, B]
    # exact reciprocal to keep the 1e-3 sim check; approx=True -> EUP if allowed
    inv_t = pl.reciprocal(jnp.full((B, B), temp_ref[0], f32), approx=False)
    sim = sim * inv_t

    # ---- lane-dense [B, 128] output slab: direct slice stores, no concat -----
    out_ref[:, 0:EMB] = img_n
    out_ref[:, EMB:2 * EMB] = txt_n
    out_ref[:, SIM_OFF:SIM_OFF + B] = sim
    out_ref[:, SIM_OFF + B:OUT_W] = jnp.zeros((B, PAD_W), f32)


# ------------------------------- wrappers -------------------------------------
def _patchify(images):
    """NCHW [B,3,H,W] -> [B*P, PATCH_DIM] (row-major patches).

    Single tiny XLA transpose outside the kernel; unavoidable and negligible.
    """
    b, c, h, w = images.shape
    x = images.reshape(b, c, h // PATCH, PATCH, w // PATCH, PATCH)
    x = jnp.transpose(x, (0, 2, 4, 1, 3, 5))          # [B, hP, wP, C, p, p]
    return x.reshape(b * P, PATCH_DIM)


@jax.jit
def clip_forward(images, token_ids, slab, temperature):
    """Returns (image_features, text_features, similarity) like CLIPModel.forward."""
    patches = _patchify(images).astype(jnp.float32)                  # [B*P, 48]

    out = pl.pallas_call(
        _clip_fused_kernel,
        out_shape=jax.ShapeDtypeStruct((B, OUT_W), jnp.float32),
        in_specs=[_VMEM, _SMEM, _VMEM, _SMEM],
        out_specs=_VMEM,
    )(patches, token_ids, slab, temperature)

    img_n = out[:, :EMB]
    txt_n = out[:, EMB:2 * EMB]
    sim = out[:, SIM_OFF:SIM_OFF + B]
    return img_n, txt_n, sim


def _reference_forward(images, token_ids, params):
    """Pure-JAX reference for correctness checking."""
    patches = _patchify(images).astype(jnp.float32)
    h = jnp.maximum(patches @ params["w_patch"] + params["b_patch"], 0.0)
    pooled = jnp.mean(h.reshape(B, P, FEAT), axis=1)
    img_feat = pooled @ params["w_fc"] + params["b_fc"]

    tok_emb = jnp.take(params["tok_table"], token_ids, axis=0)
    txt_feat = jnp.mean(tok_emb, axis=1) @ params["w_txt"] + params["b_txt"]

    ip = img_feat @ params["w_img_proj"] + params["b_img_proj"]
    tp = txt_feat @ params["w_txt_proj"] + params["b_txt_proj"]
    img_n = ip / jnp.maximum(jnp.linalg.norm(ip, axis=1, keepdims=True), 1e-12)
    txt_n = tp / jnp.maximum(jnp.linalg.norm(tp, axis=1, keepdims=True), 1e-12)
    sim = (img_n @ txt_n.T) / params["temperature"][0]
    return img_n, txt_n, sim


def _init_params(key):
    ks = jax.random.split(key, 8)
    scale = 0.02
    # NOTE: PyTorch nn.Linear stores weight as [out, in]; we keep [in, out] so
    # the kernel computes x @ W + b directly.
    w_patch = scale * jax.random.normal(ks[0], (PATCH_DIM, FEAT), jnp.float32)
    b_patch = jnp.zeros((FEAT,), jnp.float32)
    w_fc = scale * jax.random.normal(ks[1], (FEAT, EMB), jnp.float32)
    b_fc = jnp.zeros((EMB,), jnp.float32)
    tok_table = scale * jax.random.normal(ks[2], (VOCAB, D_TOK), jnp.float32)
    w_txt = scale * jax.random.normal(ks[3], (D_TOK, EMB), jnp.float32)
    b_txt = jnp.zeros((EMB,), jnp.float32)
    w_img_proj = scale * jax.random.normal(ks[4], (EMB, EMB), jnp.float32)
    b_img_proj = scale * jax.random.normal(ks[5], (EMB,), jnp.float32)
    w_txt_proj = scale * jax.random.normal(ks[6], (EMB, EMB), jnp.float32)
    b_txt_proj = scale * jax.random.normal(ks[7], (EMB,), jnp.float32)

    # block-diagonal 1/P averaging matrix (keeps the image pool on the MXU);
    # fine at B=2, replace with per-tile pooling if batch ever grows.
    pool_img = jnp.kron(jnp.eye(B, dtype=jnp.float32),
                        jnp.full((1, P), 1.0 / P, jnp.float32))        # [B, B*P]

    # fused block-diagonal weights with bias rows (consumed via a ones column)
    w1 = jnp.zeros((W1_ROWS_PAD, 2 * EMB), jnp.float32)                # fc (+) txt
    w1 = w1.at[0:FEAT, 0:EMB].set(w_fc)
    w1 = w1.at[FEAT:FEAT + D_TOK, EMB:2 * EMB].set(w_txt)
    w1 = w1.at[FEAT + D_TOK, 0:EMB].set(b_fc)
    w1 = w1.at[FEAT + D_TOK, EMB:2 * EMB].set(b_txt)

    w2 = jnp.zeros((W2_ROWS_PAD, 2 * EMB), jnp.float32)                # img (+) txt proj
    w2 = w2.at[0:EMB, 0:EMB].set(w_img_proj)
    w2 = w2.at[EMB:2 * EMB, EMB:2 * EMB].set(w_txt_proj)
    w2 = w2.at[2 * EMB, 0:EMB].set(b_img_proj)
    w2 = w2.at[2 * EMB, EMB:2 * EMB].set(b_txt_proj)

    # single 128-lane-padded parameter slab; the kernel uses static row views
    slab = jnp.zeros((SLAB_ROWS, SLAB_W), jnp.float32)
    slab = slab.at[WP_R0:WP_R0 + PATCH_DIM, 0:FEAT].set(w_patch)
    slab = slab.at[BP_R0, 0:FEAT].set(b_patch)
    slab = slab.at[PIMG_R0:PIMG_R0 + B, 0:B * P].set(pool_img)
    slab = slab.at[TOK_R0:TOK_R0 + VOCAB, 0:D_TOK].set(tok_table)
    slab = slab.at[W1_R0:W1_R0 + W1_ROWS_PAD, 0:2 * EMB].set(w1)
    slab = slab.at[W2_R0:W2_R0 + W2_ROWS_PAD, 0:2 * EMB].set(w2)

    return {
        # raw params kept only for the pure-JAX reference check
        "w_patch": w_patch, "b_patch": b_patch, "w_fc": w_fc, "b_fc": b_fc,
        "tok_table": tok_table, "w_txt": w_txt, "b_txt": b_txt,
        "w_img_proj": w_img_proj, "b_img_proj": b_img_proj,
        "w_txt_proj": w_txt_proj, "b_txt_proj": b_txt_proj,
        # kernel-side packed parameters
        "slab": slab,
        "temperature": jnp.full((1,), TEMPERATURE, jnp.float32),
    }


if __name__ == "__main__":
    key = jax.random.PRNGKey(0)
    k_img, k_tok, k_par = jax.random.split(key, 3)

    images = jax.random.normal(k_img, (B, C_IN, H, W), jnp.float32)      # NCHW
    token_ids = jax.random.randint(k_tok, (B, SEQ), 0, VOCAB, dtype=jnp.int32)
    params = _init_params(k_par)

    img_f, txt_f, sim = clip_forward(images, token_ids,
                                     params["slab"], params["temperature"])
    jax.block_until_ready((img_f, txt_f, sim))

    ref_img, ref_txt, ref_sim = _reference_forward(images, token_ids, params)
    assert img_f.shape == (B, EMB) and txt_f.shape == (B, EMB) and sim.shape == (B, B)
    assert jnp.allclose(img_f, ref_img, atol=1e-4, rtol=1e-4)
    assert jnp.allclose(txt_f, ref_txt, atol=1e-4, rtol=1e-4)
    assert jnp.allclose(sim, ref_sim, atol=1e-3, rtol=1e-3)

    print("KERNEL_OK")
</pallas_src>

<mosaic_0001>
module attributes {stable_mosaic.version = 11 : i64} {
  func.func @_clip_fused_kernel(%arg0: memref<32x48xf32, #tpu.memory_space<vmem>>, %arg1: memref<2x8xi32, #tpu.memory_space<smem>>, %arg2: memref<320x128xf32, #tpu.memory_space<vmem>>, %arg3: memref<1xf32, #tpu.memory_space<smem>>, %arg4: memref<2x128xf32, #tpu.memory_space<vmem>>) attributes {dimension_semantics = [], scalar_prefetch = 0 : i64, scratch_operands = 0 : i64, tpu.core_type = #tpu.core_type<tc>} {
    %c0 = arith.constant 0 : index
    %c0_0 = arith.constant 0 : index
    %0 = vector.load %arg2[%c0, %c0_0] : memref<320x128xf32, #tpu.memory_space<vmem>>, vector<48x64xf32>
    %c48 = arith.constant 48 : index
    %c0_1 = arith.constant 0 : index
    %1 = vector.load %arg2[%c48, %c0_1] : memref<320x128xf32, #tpu.memory_space<vmem>>, vector<1x64xf32>
    %c56 = arith.constant 56 : index
    %c0_2 = arith.constant 0 : index
    %2 = vector.load %arg2[%c56, %c0_2] : memref<320x128xf32, #tpu.memory_space<vmem>>, vector<2x32xf32>
    %c120 = arith.constant 120 : index
    %c0_3 = arith.constant 0 : index
    %3 = vector.load %arg2[%c120, %c0_3] : memref<320x128xf32, #tpu.memory_space<vmem>>, vector<128x64xf32>
    %c248 = arith.constant 248 : index
    %c0_4 = arith.constant 0 : index
    %4 = vector.load %arg2[%c248, %c0_4] : memref<320x128xf32, #tpu.memory_space<vmem>>, vector<72x64xf32>
    %c0_5 = arith.constant 0 : index
    %c0_6 = arith.constant 0 : index
    %5 = vector.load %arg0[%c0_5, %c0_6] : memref<32x48xf32, #tpu.memory_space<vmem>>, vector<32x48xf32>
    %cst = arith.constant dense<0.000000e+00> : vector<32x64xf32>
    %6 = tpu.matmul %5, %0, %cst {dimension_numbers = #tpu.dot_dimension_numbers<[1], [0], [0], [1], [0, 0, 1, 1], [], []>} : vector<32x48xf32>, vector<48x64xf32>, vector<32x64xf32> -> vector<32x64xf32>
    %7 = vector.broadcast %1 : vector<1x64xf32> to vector<32x64xf32>
    %8 = arith.addf %6, %7 : vector<32x64xf32>
    %cst_7 = arith.constant 0.000000e+00 : f32
    %9 = vector.broadcast %cst_7 : f32 to vector<32x64xf32>
    %10 = arith.maximumf %8, %9 : vector<32x64xf32>
    %cst_8 = arith.constant dense<0.000000e+00> : vector<2x64xf32>
    %11 = tpu.matmul %2, %10, %cst_8 {dimension_numbers = #tpu.dot_dimension_numbers<[1], [0], [0], [1], [0, 0, 1, 1], [], []>} : vector<2x32xf32>, vector<32x64xf32>, vector<2x64xf32> -> vector<2x64xf32>
    %cst_9 = arith.constant 0.000000e+00 : f32
    %12 = vector.broadcast %cst_9 : f32 to vector<1x128xf32>
    %c0_10 = arith.constant 0 : index
    %c0_11 = arith.constant 0 : index
    %13 = memref.load %arg1[%c0_10, %c0_11] : memref<2x8xi32, #tpu.memory_space<smem>>
    %c64_i32 = arith.constant 64 : i32
    %14 = arith.addi %c64_i32, %13 : i32
    %15 = arith.index_cast %14 : i32 to index
    %c0_12 = arith.constant 0 : index
    %16 = vector.load %arg2[%15, %c0_12] : memref<320x128xf32, #tpu.memory_space<vmem>>, vector<1x128xf32>
    %17 = arith.addf %12, %16 : vector<1x128xf32>
    %c0_13 = arith.constant 0 : index
    %c1 = arith.constant 1 : index
    %18 = memref.load %arg1[%c0_13, %c1] : memref<2x8xi32, #tpu.memory_space<smem>>
    %c64_i32_14 = arith.constant 64 : i32
    %19 = arith.addi %c64_i32_14, %18 : i32
    %20 = arith.index_cast %19 : i32 to index
    %c0_15 = arith.constant 0 : index
    %21 = vector.load %arg2[%20, %c0_15] : memref<320x128xf32, #tpu.memory_space<vmem>>, vector<1x128xf32>
    %22 = arith.addf %17, %21 : vector<1x128xf32>
    %c0_16 = arith.constant 0 : index
    %c2 = arith.constant 2 : index
    %23 = memref.load %arg1[%c0_16, %c2] : memref<2x8xi32, #tpu.memory_space<smem>>
    %c64_i32_17 = arith.constant 64 : i32
    %24 = arith.addi %c64_i32_17, %23 : i32
    %25 = arith.index_cast %24 : i32 to index
    %c0_18 = arith.constant 0 : index
    %26 = vector.load %arg2[%25, %c0_18] : memref<320x128xf32, #tpu.memory_space<vmem>>, vector<1x128xf32>
    %27 = arith.addf %22, %26 : vector<1x128xf32>
    %c0_19 = arith.constant 0 : index
    %c3 = arith.constant 3 : index
    %28 = memref.load %arg1[%c0_19, %c3] : memref<2x8xi32, #tpu.memory_space<smem>>
    %c64_i32_20 = arith.constant 64 : i32
    %29 = arith.addi %c64_i32_20, %28 : i32
    %30 = arith.index_cast %29 : i32 to index
    %c0_21 = arith.constant 0 : index
    %31 = vector.load %arg2[%30, %c0_21] : memref<320x128xf32, #tpu.memory_space<vmem>>, vector<1x128xf32>
    %32 = arith.addf %27, %31 : vector<1x128xf32>
    %c0_22 = arith.constant 0 : index
    %c4 = arith.constant 4 : index
    %33 = memref.load %arg1[%c0_22, %c4] : memref<2x8xi32, #tpu.memory_space<smem>>
    %c64_i32_23 = arith.constant 64 : i32
    %34 = arith.addi %c64_i32_23, %33 : i32
    %35 = arith.index_cast %34 : i32 to index
    %c0_24 = arith.constant 0 : index
    %36 = vector.load %arg2[%35, %c0_24] : memref<320x128xf32, #tpu.memory_space<vmem>>, vector<1x128xf32>
    %37 = arith.addf %32, %36 : vector<1x128xf32>
    %c0_25 = arith.constant 0 : index
    %c5 = arith.constant 5 : index
    %38 = memref.load %arg1[%c0_25, %c5] : memref<2x8xi32, #tpu.memory_space<smem>>
    %c64_i32_26 = arith.constant 64 : i32
    %39 = arith.addi %c64_i32_26, %38 : i32
    %40 = arith.index_cast %39 : i32 to index
    %c0_27 = arith.constant 0 : index
    %41 = vector.load %arg2[%40, %c0_27] : memref<320x128xf32, #tpu.memory_space<vmem>>, vector<1x128xf32>
    %42 = arith.addf %37, %41 : vector<1x128xf32>
    %c0_28 = arith.constant 0 : index
    %c6 = arith.constant 6 : index
    %43 = memref.load %arg1[%c0_28, %c6] : memref<2x8xi32, #tpu.memory_space<smem>>
    %c64_i32_29 = arith.constant 64 : i32
    %44 = arith.addi %c64_i32_29, %43 : i32
    %45 = arith.index_cast %44 : i32 to index
    %c0_30 = arith.constant 0 : index
    %46 = vector.load %arg2[%45, %c0_30] : memref<320x128xf32, #tpu.memory_space<vmem>>, vector<1x128xf32>
    %47 = arith.addf %42, %46 : vector<1x128xf32>
    %c0_31 = arith.constant 0 : index
    %c7 = arith.constant 7 : index
    %48 = memref.load %arg1[%c0_31, %c7] : memref<2x8xi32, #tpu.memory_space<smem>>
    %c64_i32_32 = arith.constant 64 : i32
    %49 = arith.addi %c64_i32_32, %48 : i32
    %50 = arith.index_cast %49 : i32 to index
    %c0_33 = arith.constant 0 : index
    %51 = vector.load %arg2[%50, %c0_33] : memref<320x128xf32, #tpu.memory_space<vmem>>, vector<1x128xf32>
    %52 = arith.addf %47, %51 : vector<1x128xf32>
    %cst_34 = arith.constant 0.000000e+00 : f32
    %53 = vector.broadcast %cst_34 : f32 to vector<1x128xf32>
    %c1_35 = arith.constant 1 : index
    %c0_36 = arith.constant 0 : index
    %54 = memref.load %arg1[%c1_35, %c0_36] : memref<2x8xi32, #tpu.memory_space<smem>>
    %c64_i32_37 = arith.constant 64 : i32
    %55 = arith.addi %c64_i32_37, %54 : i32
    %56 = arith.index_cast %55 : i32 to index
    %c0_38 = arith.constant 0 : index
    %57 = vector.load %arg2[%56, %c0_38] : memref<320x128xf32, #tpu.memory_space<vmem>>, vector<1x128xf32>
    %58 = arith.addf %53, %57 : vector<1x128xf32>
    %c1_39 = arith.constant 1 : index
    %c1_40 = arith.constant 1 : index
    %59 = memref.load %arg1[%c1_39, %c1_40] : memref<2x8xi32, #tpu.memory_space<smem>>
    %c64_i32_41 = arith.constant 64 : i32
    %60 = arith.addi %c64_i32_41, %59 : i32
    %61 = arith.index_cast %60 : i32 to index
    %c0_42 = arith.constant 0 : index
    %62 = vector.load %arg2[%61, %c0_42] : memref<320x128xf32, #tpu.memory_space<vmem>>, vector<1x128xf32>
    %63 = arith.addf %58, %62 : vector<1x128xf32>
    %c1_43 = arith.constant 1 : index
    %c2_44 = arith.constant 2 : index
    %64 = memref.load %arg1[%c1_43, %c2_44] : memref<2x8xi32, #tpu.memory_space<smem>>
    %c64_i32_45 = arith.constant 64 : i32
    %65 = arith.addi %c64_i32_45, %64 : i32
    %66 = arith.index_cast %65 : i32 to index
    %c0_46 = arith.constant 0 : index
    %67 = vector.load %arg2[%66, %c0_46] : memref<320x128xf32, #tpu.memory_space<vmem>>, vector<1x128xf32>
    %68 = arith.addf %63, %67 : vector<1x128xf32>
    %c1_47 = arith.constant 1 : index
    %c3_48 = arith.constant 3 : index
    %69 = memref.load %arg1[%c1_47, %c3_48] : memref<2x8xi32, #tpu.memory_space<smem>>
    %c64_i32_49 = arith.constant 64 : i32
    %70 = arith.addi %c64_i32_49, %69 : i32
    %71 = arith.index_cast %70 : i32 to index
    %c0_50 = arith.constant 0 : index
    %72 = vector.load %arg2[%71, %c0_50] : memref<320x128xf32, #tpu.memory_space<vmem>>, vector<1x128xf32>
    %73 = arith.addf %68, %72 : vector<1x128xf32>
    %c1_51 = arith.constant 1 : index
    %c4_52 = arith.constant 4 : index
    %74 = memref.load %arg1[%c1_51, %c4_52] : memref<2x8xi32, #tpu.memory_space<smem>>
    %c64_i32_53 = arith.constant 64 : i32
    %75 = arith.addi %c64_i32_53, %74 : i32
    %76 = arith.index_cast %75 : i32 to index
    %c0_54 = arith.constant 0 : index
    %77 = vector.load %arg2[%76, %c0_54] : memref<320x128xf32, #tpu.memory_space<vmem>>, vector<1x128xf32>
    %78 = arith.addf %73, %77 : vector<1x128xf32>
    %c1_55 = arith.constant 1 : index
    %c5_56 = arith.constant 5 : index
    %79 = memref.load %arg1[%c1_55, %c5_56] : memref<2x8xi32, #tpu.memory_space<smem>>
    %c64_i32_57 = arith.constant 64 : i32
    %80 = arith.addi %c64_i32_57, %79 : i32
    %81 = arith.index_cast %80 : i32 to index
    %c0_58 = arith.constant 0 : index
    %82 = vector.load %arg2[%81, %c0_58] : memref<320x128xf32, #tpu.memory_space<vmem>>, vector<1x128xf32>
    %83 = arith.addf %78, %82 : vector<1x128xf32>
    %c1_59 = arith.constant 1 : index
    %c6_60 = arith.constant 6 : index
    %84 = memref.load %arg1[%c1_59, %c6_60] : memref<2x8xi32, #tpu.memory_space<smem>>
    %c64_i32_61 = arith.constant 64 : i32
    %85 = arith.addi %c64_i32_61, %84 : i32
    %86 = arith.index_cast %85 : i32 to index
    %c0_62 = arith.constant 0 : index
    %87 = vector.load %arg2[%86, %c0_62] : memref<320x128xf32, #tpu.memory_space<vmem>>, vector<1x128xf32>
    %88 = arith.addf %83, %87 : vector<1x128xf32>
    %c1_63 = arith.constant 1 : index
    %c7_64 = arith.constant 7 : index
    %89 = memref.load %arg1[%c1_63, %c7_64] : memref<2x8xi32, #tpu.memory_space<smem>>
    %c64_i32_65 = arith.constant 64 : i32
    %90 = arith.addi %c64_i32_65, %89 : i32
    %91 = arith.index_cast %90 : i32 to index
    %c0_66 = arith.constant 0 : index
    %92 = vector.load %arg2[%91, %c0_66] : memref<320x128xf32, #tpu.memory_space<vmem>>, vector<1x128xf32>
    %93 = arith.addf %88, %92 : vector<1x128xf32>
    %94 = tpu.concatenate %52, %93 in 0 : vector<1x128xf32>, vector<1x128xf32> -> vector<2x128xf32>
    %95 = vector.extract_strided_slice %94 {offsets = [0, 0], sizes = [2, 32], strides = [1, 1]} : vector<2x128xf32> to vector<2x32xf32>
    %cst_67 = arith.constant 1.250000e-01 : f32
    %96 = vector.broadcast %cst_67 : f32 to vector<2x32xf32>
    %97 = arith.mulf %95, %96 : vector<2x32xf32>
    %cst_68 = arith.constant 1.000000e+00 : f32
    %98 = vector.broadcast %cst_68 : f32 to vector<2x1xf32>
    %cst_69 = arith.constant 0.000000e+00 : f32
    %99 = vector.broadcast %cst_69 : f32 to vector<2x31xf32>
    %100 = tpu.concatenate %11, %97, %98, %99 in 1 : vector<2x64xf32>, vector<2x32xf32>, vector<2x1xf32>, vector<2x31xf32> -> vector<2x128xf32>
    %cst_70 = arith.constant dense<0.000000e+00> : vector<2x64xf32>
    %101 = tpu.matmul %100, %3, %cst_70 {dimension_numbers = #tpu.dot_dimension_numbers<[1], [0], [0], [1], [0, 0, 1, 1], [], []>} : vector<2x128xf32>, vector<128x64xf32>, vector<2x64xf32> -> vector<2x64xf32>
    %cst_71 = arith.constant 0.000000e+00 : f32
    %102 = vector.broadcast %cst_71 : f32 to vector<2x7xf32>
    %103 = tpu.concatenate %101, %98, %102 in 1 : vector<2x64xf32>, vector<2x1xf32>, vector<2x7xf32> -> vector<2x72xf32>
    %cst_72 = arith.constant dense<0.000000e+00> : vector<2x64xf32>
    %104 = tpu.matmul %103, %4, %cst_72 {dimension_numbers = #tpu.dot_dimension_numbers<[1], [0], [0], [1], [0, 0, 1, 1], [], []>} : vector<2x72xf32>, vector<72x64xf32>, vector<2x64xf32> -> vector<2x64xf32>
    %105 = vector.extract_strided_slice %104 {offsets = [0, 0], sizes = [2, 32], strides = [1, 1]} : vector<2x64xf32> to vector<2x32xf32>
    %106 = vector.extract_strided_slice %104 {offsets = [0, 32], sizes = [2, 32], strides = [1, 1]} : vector<2x64xf32> to vector<2x32xf32>
    %107 = arith.mulf %105, %105 : vector<2x32xf32>
    %cst_73 = arith.constant dense<0.000000e+00> : vector<2xf32>
    %108 = vector.multi_reduction <add>, %107, %cst_73 [1] : vector<2x32xf32> to vector<2xf32>
    %109 = vector.shape_cast %108 : vector<2xf32> to vector<2x1xf32>
    %cst_74 = arith.constant 1.000000e-24 : f32
    %110 = vector.broadcast %cst_74 : f32 to vector<2x1xf32>
    %111 = arith.maximumf %109, %110 : vector<2x1xf32>
    %112 = math.rsqrt %111 : vector<2x1xf32>
    %113 = vector.broadcast %112 : vector<2x1xf32> to vector<2x32xf32>
    %114 = arith.mulf %105, %113 : vector<2x32xf32>
    %115 = arith.mulf %106, %106 : vector<2x32xf32>
    %cst_75 = arith.constant dense<0.000000e+00> : vector<2xf32>
    %116 = vector.multi_reduction <add>, %115, %cst_75 [1] : vector<2x32xf32> to vector<2xf32>
    %117 = vector.shape_cast %116 : vector<2xf32> to vector<2x1xf32>
    %cst_76 = arith.constant 1.000000e-24 : f32
    %118 = vector.broadcast %cst_76 : f32 to vector<2x1xf32>
    %119 = arith.maximumf %117, %118 : vector<2x1xf32>
    %120 = math.rsqrt %119 : vector<2x1xf32>
    %121 = vector.broadcast %120 : vector<2x1xf32> to vector<2x32xf32>
    %122 = arith.mulf %106, %121 : vector<2x32xf32>
    %cst_77 = arith.constant dense<0.000000e+00> : vector<2x2xf32>
    %123 = tpu.matmul %114, %122, %cst_77 {dimension_numbers = #tpu.dot_dimension_numbers<[1], [1], [0], [0], [0, 0, 1, 0], [], []>} : vector<2x32xf32>, vector<2x32xf32>, vector<2x2xf32> -> vector<2x2xf32>
    %c0_78 = arith.constant 0 : index
    %124 = memref.load %arg3[%c0_78] : memref<1xf32, #tpu.memory_space<smem>>
    %125 = vector.broadcast %124 : f32 to vector<2x2xf32>
    %126 = tpu.reciprocal %125 : vector<2x2xf32> -> vector<2x2xf32>
    %127 = arith.mulf %123, %126 : vector<2x2xf32>
    %c0_79 = arith.constant 0 : index
    %c0_80 = arith.constant 0 : index
    %128 = vector.load %arg4[%c0_79, %c0_80] : memref<2x128xf32, #tpu.memory_space<vmem>>, vector<2x32xf32>
    tpu.vector_store %arg4[%c0_79, %c0_80], %114 {strides = array<i32>} : memref<2x128xf32, #tpu.memory_space<vmem>>, vector<2x32xf32>,
    %c0_81 = arith.constant 0 : index
    %c32 = arith.constant 32 : index
    %129 = vector.load %arg4[%c0_81, %c32] : memref<2x128xf32, #tpu.memory_space<vmem>>, vector<2x32xf32>
    tpu.vector_store %arg4[%c0_81, %c32], %122 {strides = array<i32>} : memref<2x128xf32, #tpu.memory_space<vmem>>, vector<2x32xf32>,
    %c0_82 = arith.constant 0 : index
    %c64 = arith.constant 64 : index
    %130 = vector.load %arg4[%c0_82, %c64] : memref<2x128xf32, #tpu.memory_space<vmem>>, vector<2x2xf32>
    tpu.vector_store %arg4[%c0_82, %c64], %127 {strides = array<i32>} : memref<2x128xf32, #tpu.memory_space<vmem>>, vector<2x2xf32>,
    %cst_83 = arith.constant 0.000000e+00 : f32
    %131 = vector.broadcast %cst_83 : f32 to vector<2x62xf32>
    %c0_84 = arith.constant 0 : index
    %c66 = arith.constant 66 : index
    %132 = vector.load %arg4[%c0_84, %c66] : memref<2x128xf32, #tpu.memory_space<vmem>>, vector<2x62xf32>
    tpu.vector_store %arg4[%c0_84, %c66], %131 {strides = array<i32>} : memref<2x128xf32, #tpu.memory_space<vmem>>, vector<2x62xf32>,
    return
  }
}

</mosaic_0001>

<bundles_post_ra>
// kernel: clip_forward.1
= control target key start
LH: loop header
LB: loop body
LE: loop exit
PB: predicated region body
PF: predicated region fallthrough
CT: control target
= control target key end

     0   :  { %10 = vsyncpa [#allocation4], 0  ;;  %s1145_s0 = inlined_call_operand.vmem [shape: f32[32,48], index: 0, kind: input, shape index: {}]   ;;  %s1146_s1 = inlined_call_operand.vmem [shape: s32[2,8], index: 1, kind: input, shape index: {}]   ;;  %s1147_s2 = inlined_call_operand.vmem [shape: f32[320,128], index: 2, kind: input, shape index: {}]   ;;  %s1148_s3 = inlined_call_operand.<no memory space> [shape: f32[1], index: 3, kind: input, shape index: {}]   ;;  %s1149_s4 = inlined_call_operand.vmem [shape: f32[2,128], index: 4, kind: output, shape index: {}]  }
   0x1   :  { %s19_s17 = sshll.u32 %s1146_s1, 4  ;;  %s20_s17 = int_to_ptr.vmem [resolvable:$true] %s19_s17 }
   0x2   :  { %s880_s18 = scalar_lea.vmem %s20_s17, 32  ;;  %p885_p1 = scmp.lt.s32.totalorder %s20_s17, %s20_s17 }
   0x3   :  { %p881_p0 = scmp.ne.s32.totalorder %s20_s17, %s880_s18  ;;  %p886_p2 = scmp.lt.s32.totalorder %s880_s18, %s880_s18 }
   0x5   :  { %p887_p3 = por %p886_p2, %p885_p1 }
   0x7   :  { %p888_p4 = pnand %p887_p3, %p881_p0 }
   0x9   :  { %891 = shalt.err (!%p888_p4)
}
   0xa   :  { %s894_s19 = smov [#allocation3]  }
   0xb   :  { %22 = dma.vmem_to_smem %s20_s17, 32, %s894_s19, [#allocation4]  }
   0xc   :  { %892 = dma.done.wait [#allocation4], 32  }
   0xd   :  { %893 = vsyncadd [#allocation4], 4294967264 }
   0xe   :  { %30 = sfence }
   0xf   :  { %v31_v0 = vld [vmem:[%s1147_s2] sm:$0xff]  ;;  %v32_v1 = vld [vmem:[%s1147_s2 + $0x8] sm:$0xff]  ;;  %v33_v2 = vld [vmem:[%s1147_s2 + $0x10] sm:$0xff]  ;;  %vm72_vm0 = vcmask 392192   ;;  %v895_v13 = vmov 0.0|0.0   ;;  %vm896_vm1 = vmmov 0  }
  0x10   :  { %v814_v3 = vpack.c.bf16 %v32_v1, %v31_v0  ;;  %v34_v4 = vld [vmem:[%s1147_s2 + $0x18] sm:$0xff]  ;;  %v35_v6 = vld [vmem:[%s1147_s2 + $0x20] sm:$0xff]  ;;  %v36_v7 = vld [vmem:[%s1147_s2 + $0x28] sm:$0xff]  ;;  %826 = vmatprep.subr.bf16.mxu1 %v895_v13  ;;  %v897_v14 = vmov 0.0   ;;  %s248_s13 = sld [smem:[#allocation3]]  ;;  %s646_s14 = sld [smem:[#allocation3 + $0x1]] }
  0x11   :  { %v818_v5 = vpack.c.bf16 %v34_v4, %v33_v2  ;;  %v64_v8 = vld [vmem:[%s1145_s0] sm:$0xff]  ;;  %v822_v9 = vpack.c.bf16 %v36_v7, %v35_v6  ;;  %v65_v10 = vld [vmem:[%s1145_s0 + $0x8] sm:$0xff]  ;;  %v66_v11 = vld [vmem:[%s1145_s0 + $0x10] sm:$0xff]  ;;  %750 = vmatprep.mubr.msk.f32.mxu1 %vm896_vm1, %v897_v14  ;;  %s648_s15 = sld [smem:[#allocation3 + $0x2]]  ;;  %s650_s16 = sld [smem:[#allocation3 + $0x3]]  ;;  %vm331_vm2 = vcmask 1040384  }
  0x12   :  { %815 = vmatprep.subr.bf16.mxu0 %v814_v3  ;;  %736 = vmatprep.mubr.msk.f32.mxu0 %vm72_vm0, %v64_v8  ;;  %v67_v12 = vld [vmem:[%s1145_s0 + $0x18] sm:$0xff]  ;;  %s652_s0 = sld [smem:[#allocation3 + $0x4]]  ;;  %s968_s17 = sld [smem:[#allocation3 + $0x5]]  ;;  %v639_v48 = vld [vmem:[%s1147_s2 + $0x30] ss:$0 sm:$0xff]  ;;  %v40_v63 = vld [vmem:[%s1147_s2 + $0x80] sm:$0xff] }
  0x13   :  { %817 = vmatpush3.bf16.msra.mxu0 %v814_v3  ;;  %s660_s18 = sld [smem:[#allocation3 + $0x80]]  ;;  %s662_s19 = sld [smem:[#allocation3 + $0x81]]  ;;  %v39_v62 = vld [vmem:[%s1147_s2 + $0x78] sm:$0xff]  ;;  %vm174_vm3 = vcmask 261120   ;;  %v41_v3 = vld [vmem:[%s1147_s2 + $0x88] sm:$0xff]  ;;  %v42_v4 = vld [vmem:[%s1147_s2 + $0x90] sm:$0xff] }
  0x14   :  { %819 = vmatprep.subr.bf16.mxu0 %v818_v5  ;;  %s664_s20 = sld [smem:[#allocation3 + $0x82]]  ;;  %s666_s21 = sld [smem:[#allocation3 + $0x83]]  ;;  %v38_v1 = vld [vmem:[%s1147_s2 + $0x38] sm:$0x3]  ;;  %v833_v2 = vpack.c.bf16 %v40_v63, %v39_v62  ;;  %v44_v7 = vld [vmem:[%s1147_s2 + $0xa0] sm:$0xff]  ;;  %vm338_vm4 = vcmask 523264   ;;  %v588_v62 = vstv %s1148_s3 }
  0x15   :  { %s656_s10 = sld [smem:[#allocation3 + $0x6]]  ;;  %s985_s11 = sld [smem:[#allocation3 + $0x7]]  ;;  %v43_v6 = vld [vmem:[%s1147_s2 + $0x98] sm:$0xff]  ;;  %vm340_vm5 = vcmask 785408   ;;  %vm342_vm6 = vcmask 793600   ;;  %vm415_vm7 = vcmask 531456  }
  0x16   :  { %s607_s1 = scalar_lea.vmem %s1147_s2, %s248_s13  ;;  %s609_s26 = scalar_lea.vmem %s1147_s2, %s646_s14  ;;  %v839_v8 = vpack.c.bf16 %v44_v7, %v43_v6  ;;  %vm417_vm8 = vcmask 588800   ;;  %vm492_vm9 = vcmask 254976   ;;  %vm592_vm10 = vcmask 517376  }
  0x17   :  { %821 = vmatpush3.bf16.msra.mxu0 %v818_v5  ;;  %v645_v15 = vld [vmem:[%s607_s1 + $0x40] sm:$0x1]  ;;  %s611_s29 = scalar_lea.vmem %s1147_s2, %s648_s15  ;;  %s613_s6 = scalar_lea.vmem %s1147_s2, %s650_s16  ;;  %v836_v5 = vpack.c.bf16 %v42_v4, %v41_v3  ;;  %vm598_vm11 = vcmask 534016   ;;  %vm600_vm12 = vcmask 1041936  }
  0x18   :  { %823 = vmatprep.subr.bf16.mxu0 %v822_v9  ;;  %v647_v16 = vld [vmem:[%s609_s26 + $0x40] sm:$0x1]  ;;  %s615_s9 = scalar_lea.vmem %s1147_s2, %s652_s0  ;;  %s672_s30 = sld [smem:[#allocation3 + $0x86]] }
  0x19   :  { %v257_v17 = vadd.f32 %v647_v16, %v645_v15  ;;  %v649_v18 = vld [vmem:[%s611_s29 + $0x40] sm:$0x1]  ;;  %s623_s14 = scalar_lea.vmem %s1147_s2, %s660_s18  ;;  %s625_s16 = scalar_lea.vmem %s1147_s2, %s662_s19 }
  0x1a   :  { %v651_v19 = vld [vmem:[%s613_s6 + $0x40] sm:$0x1]  ;;  %s627_s0 = scalar_lea.vmem %s1147_s2, %s664_s20  ;;  %s629_s26 = scalar_lea.vmem %s1147_s2, %s666_s21 }
  0x1b   :  { %825 = vmatpush3.bf16.msra.mxu0 %v822_v9  ;;  %v262_v20 = vadd.f32 %v649_v18, %v257_v17  ;;  %v653_v21 = vld [vmem:[%s615_s9 + $0x40] sm:$0x1]  ;;  %s617_s18 = scalar_lea.vmem %s1147_s2, %s968_s17  ;;  %s668_s29 = sld [smem:[#allocation3 + $0x84]]  ;;  %v45_v9 = vld [vmem:[%s1147_s2 + $0xa8] sm:$0xff]  ;;  %v50_v18 = vld [vmem:[%s1147_s2 + $0xd0] sm:$0xff] }
  0x1c   :  { %856 = vmatprep.subr.bf16.mxu0 %v895_v13  ;;  %v661_v22 = vld [vmem:[%s623_s14 + $0x40] sm:$0x1]  ;;  %s670_s19 = sld [smem:[#allocation3 + $0x85]]  ;;  %s674_s5 = sld [smem:[#allocation3 + $0x87]]  ;;  %v49_v17 = vld [vmem:[%s1147_s2 + $0xc8] sm:$0xff] }
  0x1d   :  { %v663_v23 = vld [vmem:[%s625_s16 + $0x40] sm:$0x1]  ;;  %v267_v24 = vadd.f32 %v651_v19, %v262_v20  ;;  %s619_s21 = scalar_lea.vmem %s1147_s2, %s656_s10  ;;  %s621_s10 = scalar_lea.vmem %s1147_s2, %s985_s11  ;;  %v848_v19 = vpack.c.bf16 %v50_v18, %v49_v17  ;;  %v51_v20 = vld [vmem:[%s1147_s2 + $0xd8] sm:$0xff] }
  0x1e   :  { %737 = vmatmul.mubr.msk.f32.vlgmr.msra.gmra.mrb[0].mxu0 %vm72_vm0, %v65_v10  ;;  %v297_v25 = vadd.f32 %v663_v23, %v661_v22  ;;  %v665_v26 = vld [vmem:[%s627_s0 + $0x40] sm:$0x1]  ;;  %s635_s22 = scalar_lea.vmem %s1147_s2, %s672_s30  ;;  %s898_s25 = smov 64   ;;  %v46_v10 = vld [vmem:[%s1147_s2 + $0xb0] sm:$0xff]  ;;  %v53_v23 = vld [vmem:[%s1147_s2 + $0xe8] sm:$0xff] }
  0x1f   :  { %739 = vmatprep.mubr.msk.f32.mxu0 %vm72_vm0, %v66_v11  ;;  %v667_v27 = vld [vmem:[%s629_s26 + $0x40] sm:$0x1]  ;;  %v272_v28 = vadd.f32 %v653_v21, %v267_v24  ;;  %v842_v11 = vpack.c.bf16 %v46_v10, %v45_v9  ;;  %v54_v24 = vld [vmem:[%s1147_s2 + $0xf0] sm:$0xff]  ;;  %s899_s11 = smov 96  }
  0x20   :  { %v302_v29 = vadd.f32 %v665_v26, %v297_v25  ;;  %v655_v30 = vld [vmem:[%s617_s18 + $0x40] sm:$0x1]  ;;  %v854_v25 = vpack.c.bf16 %v54_v24, %v53_v23  ;;  %v55_v26 = vld [vmem:[%s1147_s2 + $0xf8] sm:$0xff] }
  0x21   :  { %v277_v32 = vadd.f32 %v655_v30, %v272_v28  ;;  %s631_s17 = scalar_lea.vmem %s1147_s2, %s668_s29  ;;  %v657_v33 = vld [vmem:[%s619_s21 + $0x40] sm:$0x1]  ;;  %v57_v28 = vld [vmem:[%s1147_s2 + $0x108] sm:$0xff]  ;;  %v58_v30 = vld [vmem:[%s1147_s2 + $0x110] sm:$0xff] }
  0x22   :  { %740 = vmatmul.mubr.msk.f32.gmra.mrb[2].mxu0 %vm72_vm0, %v67_v12  ;;  %v307_v31 = vadd.f32 %v667_v27, %v302_v29  ;;  %v669_v34 = vld [vmem:[%s631_s17 + $0x40] sm:$0x1]  ;;  %s633_s13 = scalar_lea.vmem %s1147_s2, %s670_s19  ;;  %s637_s24 = scalar_lea.vmem %s1147_s2, %s674_s5  ;;  %v47_v12 = vld [vmem:[%s1147_s2 + $0xb8] sm:$0xff] }
  0x23   :  { %806 = vmatprep.mubr.msk.f32.mxu0 %vm896_vm1, %v897_v14  ;;  %v671_v36 = vld [vmem:[%s633_s13 + $0x40] sm:$0x1]  ;;  %v282_v38 = vadd.f32 %v657_v33, %v277_v32  ;;  %v59_v32 = vld [vmem:[%s1147_s2 + $0x118] sm:$0xff] }
  0x24   :  { %v312_v35 = vadd.f32 %v669_v34, %v307_v31  ;;  %v673_v37 = vld [vmem:[%s635_s22 + $0x40] sm:$0x1]  ;;  %v860_v31 = vpack.c.bf16 %v58_v30, %v57_v28 }
  0x25   :  { %v659_v40 = vld [vmem:[%s621_s10 + $0x40] sm:$0x1] }
  0x26   :  { %v317_v39 = vadd.f32 %v671_v36, %v312_v35  ;;  %v675_v41 = vld [vmem:[%s637_s24 + $0x40] sm:$0x1]  ;;  %v287_v43 = vadd.f32 %v659_v40, %v282_v38  ;;  %v61_v35 = vld [vmem:[%s1147_s2 + $0x128] sm:$0xff]  ;;  %v62_v36 = vld [vmem:[%s1147_s2 + $0x130] sm:$0xff] }
  0x27   :  { %v48_v15 = vld [vmem:[%s1147_s2 + $0xc0] sm:$0xff] }
  0x28   :  { %v322_v42 = vadd.f32 %v673_v37, %v317_v39  ;;  %v845_v16 = vpack.c.bf16 %v48_v15, %v47_v12  ;;  %v52_v21 = vld [vmem:[%s1147_s2 + $0xe0] sm:$0xff]  ;;  %v866_v37 = vpack.c.bf16 %v62_v36, %v61_v35 }
  0x29   :  { %v851_v22 = vpack.c.bf16 %v52_v21, %v51_v20  ;;  %v56_v27 = vld [vmem:[%s1147_s2 + $0x100] sm:$0xff] }
  0x2a   :  { %v327_v44 = vadd.f32 %v675_v41, %v322_v42  ;;  %v857_v29 = vpack.c.bf16 %v56_v27, %v55_v26  ;;  %v60_v33 = vld [vmem:[%s1147_s2 + $0x120] sm:$0xff] }
  0x2b   :  { %v863_v34 = vpack.c.bf16 %v60_v33, %v59_v32 }
  0x2c   :  { %v329_v45 = vrot.slane %v327_v44, 7  ;;  %858 = vmatpush3.bf16.msra.mxu0 %v857_v29 }
  0x2d   :  { %859 = vmatprep.subr.bf16.mxu0 %v895_v13 }
  0x2e   :  { %v332_v46 = vsel %vm331_vm2, %v287_v43, %v329_v45  ;;  %v63_v43 = vld [vmem:[%s1147_s2 + $0x138] sm:$0xff] }
  0x2f   :  { %v333_v47 = vmul.f32 0.125, %v332_v46 }
  0x30   :  { %861 = vmatpush3.bf16.msra.mxu0 %v860_v31 }
  0x31   :  { %335 = vrot.lane.b32.xlu0 %v333_v47, %s898_s25  ;;  %862 = vmatprep.subr.bf16.mxu0 %v895_v13 }
  0x34   :  { %864 = vmatpush3.bf16.msra.mxu0 %v863_v34 }
  0x35   :  { %865 = vmatprep.subr.bf16.mxu0 %v895_v13 }
  0x38   :  { %867 = vmatpush3.bf16.msra.mxu0 %v866_v37 }
  0x39   :  { %804 = vmatprep.subr.mxu0 %v897_v14 }
  0x3c   :  { %805 = vmatpush3.msra.mxu0 %v63_v43 }
  0x3d   :  { %809 = vmatprep.subr.mxu0 %v897_v14 }
  0xa3   :  { %v336_v38 = vpop.permute.xlu0 %335 }
  0xf1   :  { %v738_v49 = vpop.f32.mrb[0].mxu0 }
  0xf2   :  { %v157_v50 = vadd.f32 %v738_v49, %v639_v48  ;;  %v151_v51 = vpop.f32.mrb[1].mxu0 }
  0xf3   :  { %v152_v52 = vadd.f32 %v639_v48, %v151_v51 }
  0xf4   :  { %v171_v53 = vmax.f32 %v157_v50, 0.0 }
  0xf5   :  { %v170_v54 = vmax.f32 %v152_v52, 0.0  ;;  %v741_v55 = vpop.f32.mrb[2].mxu0 }
  0xf6   :  { %v167_v56 = vadd.f32 %v741_v55, %v639_v48  ;;  %v161_v57 = vpop.f32.mrb[3].mxu0 }
  0xf7   :  { %v162_v58 = vadd.f32 %v639_v48, %v161_v57  ;;  %v827_v59 = vpack.c.bf16 %v171_v53, %v170_v54 }
  0xf8   :  { %v173_v60 = vmax.f32 %v167_v56, 0.0 }
  0xf9   :  { %v172_v61 = vmax.f32 %v162_v58, 0.0  ;;  %828 = vmatpush3.bf16.msra.mxu1 %v827_v59 }
  0xfa   :  { %829 = vmatprep.subr.bf16.mxu1 %v895_v13 }
  0xfb   :  { %v830_v0 = vpack.c.bf16 %v173_v60, %v172_v61 }
  0xfd   :  { %831 = vmatpush3.bf16.msra.mxu1 %v830_v0 }
  0xfe   :  { %832 = vmatprep.subr.bf16.mxu1 %v895_v13 }
 0x100   :  { %751 = vmatmul.mubr.msk.f32.vlgmr.msra.gmra.mrb[0].mxu1 %vm174_vm3, %v38_v1 }
 0x101   :  { %834 = vmatpush3.bf16.msra.mxu1 %v833_v2  ;;  %785 = vmatprep.mubr.msk.f32.mxu1 %vm896_vm1, %v897_v14 }
 0x102   :  { %835 = vmatprep.subr.bf16.mxu1 %v895_v13 }
 0x105   :  { %837 = vmatpush3.bf16.msra.mxu1 %v836_v5 }
 0x106   :  { %838 = vmatprep.subr.bf16.mxu1 %v895_v13 }
 0x109   :  { %840 = vmatpush3.bf16.msra.mxu1 %v839_v8 }
 0x10a   :  { %841 = vmatprep.subr.bf16.mxu1 %v895_v13 }
 0x10d   :  { %843 = vmatpush3.bf16.msra.mxu1 %v842_v11 }
 0x10e   :  { %844 = vmatprep.subr.bf16.mxu1 %v895_v13 }
 0x111   :  { %846 = vmatpush3.bf16.msra.mxu1 %v845_v16 }
 0x112   :  { %847 = vmatprep.subr.bf16.mxu1 %v895_v13 }
 0x115   :  { %849 = vmatpush3.bf16.msra.mxu1 %v848_v19 }
 0x116   :  { %850 = vmatprep.subr.bf16.mxu1 %v895_v13 }
 0x119   :  { %852 = vmatpush3.bf16.msra.mxu1 %v851_v22 }
 0x11a   :  { %853 = vmatprep.subr.bf16.mxu1 %v895_v13 }
 0x11d   :  { %855 = vmatpush3.bf16.msra.mxu1 %v854_v25 }
 0x1d3   :  { %v244_v39 = vpop.f32.mrb[0].mxu1 }
 0x1d4   :  { %v339_v40 = vsel %vm338_vm4, %v244_v39, %v336_v38  ;;  %v752_v41 = vpop.f32.mrb[1].mxu1 }
 0x1d5   :  { %v341_v42 = vsel %vm340_vm5, %v339_v40, 1.0 }
 0x1d6   :  { %786 = vmatmul.mubr.msk.f32.vlgmr.msra.gmra.mrb[2].mxu1 %vm342_vm6, %v341_v42 }
 0x2a9   :  { %v410_v13 = vpop.f32.mrb[2].mxu1 }
 0x2aa   :  { %v414_v44 = vsel %vm338_vm4, %v410_v13, 1.0  ;;  %v787_v45 = vpop.f32.mrb[3].mxu1 }
 0x2ab   :  { %v416_v46 = vsel %vm415_vm7, %v414_v44, 0.0 }
 0x2ac   :  { %807 = vmatmul.mubr.msk.f32.vlgmr.msra.gmra.mrb[4].mxu0 %vm417_vm8, %v416_v46 }
 0x2ad   :  { %811 = vmatprep.mubr.msk.f32.mxu0 %vm896_vm1, %v897_v14 }
 0x37f   :  { %v487_v47 = vpop.f32.mrb[4].mxu0 }
 0x380   :  { %v491_v48 = vmul.f32 %v487_v47, %v487_v47  ;;  %v808_v49 = vpop.f32.mrb[5].mxu0 }
 0x382   :  { %500 = vrot.lane.b32.xlu0 %v491_v48, %s899_s11  ;;  %v493_v52 = vsel %vm492_vm9, %v491_v48, 0.0 }
 0x3f4   :  { %v501_v50 = vpop.permute.xlu0 %500 }
 0x3f5   :  { %v503_v51 = vsel %vm492_vm9, %v501_v50, 0.0 }
 0x3f6   :  { %504 = vadd.xlane.f32.xlu1 %v503_v51 }
 0x3fa   :  { %494 = vadd.xlane.f32.xlu1 %v493_v52 }
 0x483   :  { %v505_v53 = vpop.xlane.xlu1 %504 }
 0x484   :  { %v506_v54 = vmax.f32 %v505_v53, 1e-24 }
 0x486   :  { %874 = vrsqrt.f32 %v506_v54 }
 0x487   :  { %v495_v55 = vpop.xlane.xlu1 %494 }
 0x488   :  { %v496_v56 = vmax.f32 %v495_v55, 1e-24 }
 0x48a   :  { %876 = vrsqrt.f32 %v496_v56 }
 0x48b   :  { %878 = vrcp.f32 %v588_v62 }
 0x490   :  { %v875_v57 = vpop.eup %874 }
 0x491   :  { %v508_v58 = vmul.f32 %v875_v57, %v487_v47 }
 0x493   :  { %510 = vrot.lane.b32.xlu0 %v508_v58, %s899_s11 }
 0x494   :  { %v877_v59 = vpop.eup %876 }
 0x495   :  { %v498_v60 = vmul.f32 %v877_v59, %v487_v47  ;;  %v879_v63 = vpop.eup %878 }
 0x497   :  { %591 = vst.msk [vmem:[%s1149_s4] sm:$0x3] %vm492_vm9, %v498_v60 }
 0x498   :  { %593 = vst.msk [vmem:[%s1149_s4] sm:$0x3] %vm592_vm10, %v508_v58 }
 0x505   :  { %v511_v61 = vpop.permute.xlu0 %510 }
 0x506   :  { %810 = vmatpush3.xpose.msk.msra.mxu0 %vm174_vm3, %v511_v61 }
 0x509   :  { %812 = vmatmul.mubr.msk.f32.vlgmr.msra.gmra.mrb[6].mxu0 %vm174_vm3, %v498_v60 }
 0x5dc   :  { %v583_v0 = vpop.f32.mrb[6].mxu0 }
 0x5dd   :  { %v590_v1 = vmul.f32 %v879_v63, %v583_v0  ;;  %v813_v2 = vpop.f32.mrb[7].mxu0 }
 0x5df   :  { %595 = vrot.lane.b32.xlu1 %v590_v1, %s898_s25 }
 0x651   :  { %v596_v3 = vpop.permute.xlu1 %595 }
 0x652   :  { %599 = vst.msk [vmem:[%s1149_s4] sm:$0x3] %vm598_vm11, %v596_v3 }
 0x653   :  { %601 = vst.msk [vmem:[%s1149_s4] sm:$0x3] %vm600_vm12, %v897_v14 }
 0x654   :  { %606 = vsyncpa [#allocation4], 1 }

</bundles_post_ra>
